<compile_context>
chip_gen: v7x
topology: tpu7x:2x2x1
jax: 0.10.0
libtpu: 0.0.40
codegen_flags: <defaults>
</compile_context>

<pallas_src>
import jax
import jax.numpy as jnp
from jax.experimental import pallas as pl
from jax.experimental.pallas import tpu as pltpu


# ------------------------- problem sizes (small, deterministic) -------------------------
B = 2        # batch
N = 16       # number of nodes
D = 8        # embed_dim
C_IN = 4     # dim_in
C_OUT = 8    # dim_out
K = 3        # cheb_k
KIO = K * C_IN * C_OUT            # 96
RHS_COLS = N + KIO + C_OUT        # 120  (<= 128 lanes)


# ------------------------- fused DGCN kernel (single program, no grid) -------------------------
def dgcn_fused_kernel(emb_ref, rhs_ref, x_ref, o_ref):
    emb = emb_ref[...]                         # [N, D]
    rhs = rhs_ref[...]                         # [D, N + K*C_IN*C_OUT + C_OUT]
    xin = x_ref[...]                           # [N, B*C_IN*C_OUT]  (x replicated over C_OUT)

    # One MXU push for   [ emb@emb.T | emb@W_pool | emb@b_pool ]
    combined = jnp.dot(emb, rhs, preferred_element_type=jnp.float32)   # [N, 120]
    a = combined[:, :N]                                                # [N, N]
    w_slices = [combined[:, N + j * C_OUT: N + (j + 1) * C_OUT]        # K*C_IN x [N, C_OUT]
                for j in range(K * C_IN)]
    bias = combined[:, N + KIO: N + KIO + C_OUT]                       # [N, C_OUT]

    # supports = softmax(relu(E E^T), axis=-1)   (exact normalization)
    a = jnp.maximum(a, 0.0)
    p = jnp.exp(a - jnp.max(a, axis=-1, keepdims=True))
    s1 = p / jnp.sum(p, axis=-1, keepdims=True)                        # [N, N]

    # Chebyshev recursion applied to the propagated features:
    #   z0 = I@x = x,  z1 = S@x,  z_k = 2*(S@z_{k-1}) - z_{k-2}
    z = [xin, jnp.dot(s1, xin, preferred_element_type=jnp.float32)]
    for _ in range(2, K):
        z.append(2.0 * jnp.dot(s1, z[-1], preferred_element_type=jnp.float32) - z[-2])

    # Unrolled, lane-aligned FMA contraction; both batches gathered into one store.
    cols = []
    for b in range(B):
        acc = bias                                                     # [N, C_OUT]
        for k in range(K):
            zk = z[k]
            for i in range(C_IN):
                off = (b * C_IN + i) * C_OUT
                acc = acc + zk[:, off:off + C_OUT] * w_slices[k * C_IN + i]
        cols.append(acc)
    o_ref[...] = jnp.concatenate(cols, axis=1)                         # [N, B*C_OUT]


def dgcn_forward(x, node_embeddings, weights_pool, bias_pool):
    # Fuse all parameter matmul RHSs along lanes: [emb.T | W_pool(flat) | b_pool] -> [D, 120]
    wpool_flat = weights_pool.reshape(D, KIO)
    rhs = jnp.concatenate([node_embeddings.T, wpool_flat, bias_pool], axis=1)

    # Replicate x across the C_OUT lane axis: x_rep[n, (b*C_IN + i)*C_OUT + o] = x[b, n, i]
    x_t = jnp.transpose(x, (1, 0, 2))                                   # [N, B, C_IN]
    x_rep = jnp.broadcast_to(x_t[..., None], (N, B, C_IN, C_OUT)).reshape(N, B * C_IN * C_OUT)

    vmem = pl.BlockSpec(memory_space=pltpu.MemorySpace.VMEM)
    out_flat = pl.pallas_call(
        dgcn_fused_kernel,
        out_shape=jax.ShapeDtypeStruct((N, B * C_OUT), jnp.float32),
        in_specs=[vmem, vmem, vmem],
        out_specs=vmem,
    )(node_embeddings, rhs, x_rep)

    # out_flat[n, b*C_OUT + o]  ->  [B, N, C_OUT]
    return jnp.transpose(out_flat.reshape(N, B, C_OUT), (1, 0, 2))


# ------------------------- pure-JAX reference (for correctness check) -------------------------
def dgcn_reference(x, node_embeddings, weights_pool, bias_pool):
    with jax.default_matmul_precision('float32'):
        e = node_embeddings
        a = jnp.maximum(e @ e.T, 0.0)
        s = jax.nn.softmax(a, axis=1)
        support_set = [jnp.eye(N, dtype=jnp.float32), s]
        for _ in range(2, K):
            support_set.append(2.0 * s @ support_set[-1] - support_set[-2])
        supports = jnp.stack(support_set, axis=0)                     # [K, N, N]
        weights = jnp.einsum('nd,dkio->nkio', e, weights_pool)        # [N, K, C_IN, C_OUT]
        bias = e @ bias_pool                                          # [N, C_OUT]
        x_g = jnp.einsum('knm,bmc->bknc', supports, x)                # [B, K, N, C_IN]
        x_g = jnp.transpose(x_g, (0, 2, 1, 3))                        # [B, N, K, C_IN]
        return jnp.einsum('bnki,nkio->bno', x_g, weights) + bias


# ------------------------- main -------------------------
if __name__ == "__main__":
    key = jax.random.PRNGKey(0)
    k1, k2, k3, k4 = jax.random.split(key, 4)

    # deterministic "parameter" init (the PyTorch module leaves them uninitialized)
    weights_pool = jax.random.normal(k1, (D, K, C_IN, C_OUT), dtype=jnp.float32) * 0.1
    bias_pool = jax.random.normal(k2, (D, C_OUT), dtype=jnp.float32) * 0.1

    # inputs
    x = jax.random.normal(k3, (B, N, C_IN), dtype=jnp.float32)
    node_embeddings = jax.random.normal(k4, (N, D), dtype=jnp.float32)

    out = dgcn_forward(x, node_embeddings, weights_pool, bias_pool)
    out = jax.block_until_ready(out)

    ref = dgcn_reference(x, node_embeddings, weights_pool, bias_pool)
    assert out.shape == (B, N, C_OUT)
    assert jnp.allclose(out, ref, atol=2e-3, rtol=2e-3), "mismatch vs reference"

    print("KERNEL_OK")
</pallas_src>

<mosaic_0001>
module attributes {stable_mosaic.version = 11 : i64} {
  func.func @dgcn_fused_kernel(%arg0: memref<16x8xf32, #tpu.memory_space<vmem>>, %arg1: memref<8x120xf32, #tpu.memory_space<vmem>>, %arg2: memref<16x64xf32, #tpu.memory_space<vmem>>, %arg3: memref<16x16xf32, #tpu.memory_space<vmem>>) attributes {dimension_semantics = [], scalar_prefetch = 0 : i64, scratch_operands = 0 : i64, tpu.core_type = #tpu.core_type<tc>} {
    %c0 = arith.constant 0 : index
    %c0_0 = arith.constant 0 : index
    %0 = vector.load %arg0[%c0, %c0_0] : memref<16x8xf32, #tpu.memory_space<vmem>>, vector<16x8xf32>
    %c0_1 = arith.constant 0 : index
    %c0_2 = arith.constant 0 : index
    %1 = vector.load %arg1[%c0_1, %c0_2] : memref<8x120xf32, #tpu.memory_space<vmem>>, vector<8x120xf32>
    %c0_3 = arith.constant 0 : index
    %c0_4 = arith.constant 0 : index
    %2 = vector.load %arg2[%c0_3, %c0_4] : memref<16x64xf32, #tpu.memory_space<vmem>>, vector<16x64xf32>
    %cst = arith.constant dense<0.000000e+00> : vector<16x120xf32>
    %3 = tpu.matmul %0, %1, %cst {dimension_numbers = #tpu.dot_dimension_numbers<[1], [0], [0], [1], [0, 0, 1, 1], [], []>} : vector<16x8xf32>, vector<8x120xf32>, vector<16x120xf32> -> vector<16x120xf32>
    %4 = vector.extract_strided_slice %3 {offsets = [0, 0], sizes = [16, 16], strides = [1, 1]} : vector<16x120xf32> to vector<16x16xf32>
    %5 = vector.extract_strided_slice %3 {offsets = [0, 16], sizes = [16, 8], strides = [1, 1]} : vector<16x120xf32> to vector<16x8xf32>
    %6 = vector.extract_strided_slice %3 {offsets = [0, 24], sizes = [16, 8], strides = [1, 1]} : vector<16x120xf32> to vector<16x8xf32>
    %7 = vector.extract_strided_slice %3 {offsets = [0, 32], sizes = [16, 8], strides = [1, 1]} : vector<16x120xf32> to vector<16x8xf32>
    %8 = vector.extract_strided_slice %3 {offsets = [0, 40], sizes = [16, 8], strides = [1, 1]} : vector<16x120xf32> to vector<16x8xf32>
    %9 = vector.extract_strided_slice %3 {offsets = [0, 48], sizes = [16, 8], strides = [1, 1]} : vector<16x120xf32> to vector<16x8xf32>
    %10 = vector.extract_strided_slice %3 {offsets = [0, 56], sizes = [16, 8], strides = [1, 1]} : vector<16x120xf32> to vector<16x8xf32>
    %11 = vector.extract_strided_slice %3 {offsets = [0, 64], sizes = [16, 8], strides = [1, 1]} : vector<16x120xf32> to vector<16x8xf32>
    %12 = vector.extract_strided_slice %3 {offsets = [0, 72], sizes = [16, 8], strides = [1, 1]} : vector<16x120xf32> to vector<16x8xf32>
    %13 = vector.extract_strided_slice %3 {offsets = [0, 80], sizes = [16, 8], strides = [1, 1]} : vector<16x120xf32> to vector<16x8xf32>
    %14 = vector.extract_strided_slice %3 {offsets = [0, 88], sizes = [16, 8], strides = [1, 1]} : vector<16x120xf32> to vector<16x8xf32>
    %15 = vector.extract_strided_slice %3 {offsets = [0, 96], sizes = [16, 8], strides = [1, 1]} : vector<16x120xf32> to vector<16x8xf32>
    %16 = vector.extract_strided_slice %3 {offsets = [0, 104], sizes = [16, 8], strides = [1, 1]} : vector<16x120xf32> to vector<16x8xf32>
    %17 = vector.extract_strided_slice %3 {offsets = [0, 112], sizes = [16, 8], strides = [1, 1]} : vector<16x120xf32> to vector<16x8xf32>
    %cst_5 = arith.constant 0.000000e+00 : f32
    %18 = vector.broadcast %cst_5 : f32 to vector<16x16xf32>
    %19 = arith.maximumf %4, %18 : vector<16x16xf32>
    %cst_6 = arith.constant dense<0xFF800000> : vector<16xf32>
    %20 = vector.multi_reduction <maximumf>, %19, %cst_6 [1] : vector<16x16xf32> to vector<16xf32>
    %21 = vector.shape_cast %20 : vector<16xf32> to vector<16x1xf32>
    %22 = vector.broadcast %21 : vector<16x1xf32> to vector<16x16xf32>
    %23 = arith.subf %19, %22 : vector<16x16xf32>
    %24 = math.exp %23 : vector<16x16xf32>
    %cst_7 = arith.constant dense<0.000000e+00> : vector<16xf32>
    %25 = vector.multi_reduction <add>, %24, %cst_7 [1] : vector<16x16xf32> to vector<16xf32>
    %26 = vector.shape_cast %25 : vector<16xf32> to vector<16x1xf32>
    %27 = vector.broadcast %26 : vector<16x1xf32> to vector<16x16xf32>
    %28 = arith.divf %24, %27 : vector<16x16xf32>
    %cst_8 = arith.constant dense<0.000000e+00> : vector<16x64xf32>
    %29 = tpu.matmul %28, %2, %cst_8 {dimension_numbers = #tpu.dot_dimension_numbers<[1], [0], [0], [1], [0, 0, 1, 1], [], []>} : vector<16x16xf32>, vector<16x64xf32>, vector<16x64xf32> -> vector<16x64xf32>
    %cst_9 = arith.constant dense<0.000000e+00> : vector<16x64xf32>
    %30 = tpu.matmul %28, %29, %cst_9 {dimension_numbers = #tpu.dot_dimension_numbers<[1], [0], [0], [1], [0, 0, 1, 1], [], []>} : vector<16x16xf32>, vector<16x64xf32>, vector<16x64xf32> -> vector<16x64xf32>
    %cst_10 = arith.constant 2.000000e+00 : f32
    %31 = vector.broadcast %cst_10 : f32 to vector<16x64xf32>
    %32 = arith.mulf %31, %30 : vector<16x64xf32>
    %33 = arith.subf %32, %2 : vector<16x64xf32>
    %34 = vector.extract_strided_slice %2 {offsets = [0, 0], sizes = [16, 8], strides = [1, 1]} : vector<16x64xf32> to vector<16x8xf32>
    %35 = arith.mulf %34, %5 : vector<16x8xf32>
    %36 = arith.addf %17, %35 : vector<16x8xf32>
    %37 = vector.extract_strided_slice %2 {offsets = [0, 8], sizes = [16, 8], strides = [1, 1]} : vector<16x64xf32> to vector<16x8xf32>
    %38 = arith.mulf %37, %6 : vector<16x8xf32>
    %39 = arith.addf %36, %38 : vector<16x8xf32>
    %40 = vector.extract_strided_slice %2 {offsets = [0, 16], sizes = [16, 8], strides = [1, 1]} : vector<16x64xf32> to vector<16x8xf32>
    %41 = arith.mulf %40, %7 : vector<16x8xf32>
    %42 = arith.addf %39, %41 : vector<16x8xf32>
    %43 = vector.extract_strided_slice %2 {offsets = [0, 24], sizes = [16, 8], strides = [1, 1]} : vector<16x64xf32> to vector<16x8xf32>
    %44 = arith.mulf %43, %8 : vector<16x8xf32>
    %45 = arith.addf %42, %44 : vector<16x8xf32>
    %46 = vector.extract_strided_slice %29 {offsets = [0, 0], sizes = [16, 8], strides = [1, 1]} : vector<16x64xf32> to vector<16x8xf32>
    %47 = arith.mulf %46, %9 : vector<16x8xf32>
    %48 = arith.addf %45, %47 : vector<16x8xf32>
    %49 = vector.extract_strided_slice %29 {offsets = [0, 8], sizes = [16, 8], strides = [1, 1]} : vector<16x64xf32> to vector<16x8xf32>
    %50 = arith.mulf %49, %10 : vector<16x8xf32>
    %51 = arith.addf %48, %50 : vector<16x8xf32>
    %52 = vector.extract_strided_slice %29 {offsets = [0, 16], sizes = [16, 8], strides = [1, 1]} : vector<16x64xf32> to vector<16x8xf32>
    %53 = arith.mulf %52, %11 : vector<16x8xf32>
    %54 = arith.addf %51, %53 : vector<16x8xf32>
    %55 = vector.extract_strided_slice %29 {offsets = [0, 24], sizes = [16, 8], strides = [1, 1]} : vector<16x64xf32> to vector<16x8xf32>
    %56 = arith.mulf %55, %12 : vector<16x8xf32>
    %57 = arith.addf %54, %56 : vector<16x8xf32>
    %58 = vector.extract_strided_slice %33 {offsets = [0, 0], sizes = [16, 8], strides = [1, 1]} : vector<16x64xf32> to vector<16x8xf32>
    %59 = arith.mulf %58, %13 : vector<16x8xf32>
    %60 = arith.addf %57, %59 : vector<16x8xf32>
    %61 = vector.extract_strided_slice %33 {offsets = [0, 8], sizes = [16, 8], strides = [1, 1]} : vector<16x64xf32> to vector<16x8xf32>
    %62 = arith.mulf %61, %14 : vector<16x8xf32>
    %63 = arith.addf %60, %62 : vector<16x8xf32>
    %64 = vector.extract_strided_slice %33 {offsets = [0, 16], sizes = [16, 8], strides = [1, 1]} : vector<16x64xf32> to vector<16x8xf32>
    %65 = arith.mulf %64, %15 : vector<16x8xf32>
    %66 = arith.addf %63, %65 : vector<16x8xf32>
    %67 = vector.extract_strided_slice %33 {offsets = [0, 24], sizes = [16, 8], strides = [1, 1]} : vector<16x64xf32> to vector<16x8xf32>
    %68 = arith.mulf %67, %16 : vector<16x8xf32>
    %69 = arith.addf %66, %68 : vector<16x8xf32>
    %70 = vector.extract_strided_slice %2 {offsets = [0, 32], sizes = [16, 8], strides = [1, 1]} : vector<16x64xf32> to vector<16x8xf32>
    %71 = arith.mulf %70, %5 : vector<16x8xf32>
    %72 = arith.addf %17, %71 : vector<16x8xf32>
    %73 = vector.extract_strided_slice %2 {offsets = [0, 40], sizes = [16, 8], strides = [1, 1]} : vector<16x64xf32> to vector<16x8xf32>
    %74 = arith.mulf %73, %6 : vector<16x8xf32>
    %75 = arith.addf %72, %74 : vector<16x8xf32>
    %76 = vector.extract_strided_slice %2 {offsets = [0, 48], sizes = [16, 8], strides = [1, 1]} : vector<16x64xf32> to vector<16x8xf32>
    %77 = arith.mulf %76, %7 : vector<16x8xf32>
    %78 = arith.addf %75, %77 : vector<16x8xf32>
    %79 = vector.extract_strided_slice %2 {offsets = [0, 56], sizes = [16, 8], strides = [1, 1]} : vector<16x64xf32> to vector<16x8xf32>
    %80 = arith.mulf %79, %8 : vector<16x8xf32>
    %81 = arith.addf %78, %80 : vector<16x8xf32>
    %82 = vector.extract_strided_slice %29 {offsets = [0, 32], sizes = [16, 8], strides = [1, 1]} : vector<16x64xf32> to vector<16x8xf32>
    %83 = arith.mulf %82, %9 : vector<16x8xf32>
    %84 = arith.addf %81, %83 : vector<16x8xf32>
    %85 = vector.extract_strided_slice %29 {offsets = [0, 40], sizes = [16, 8], strides = [1, 1]} : vector<16x64xf32> to vector<16x8xf32>
    %86 = arith.mulf %85, %10 : vector<16x8xf32>
    %87 = arith.addf %84, %86 : vector<16x8xf32>
    %88 = vector.extract_strided_slice %29 {offsets = [0, 48], sizes = [16, 8], strides = [1, 1]} : vector<16x64xf32> to vector<16x8xf32>
    %89 = arith.mulf %88, %11 : vector<16x8xf32>
    %90 = arith.addf %87, %89 : vector<16x8xf32>
    %91 = vector.extract_strided_slice %29 {offsets = [0, 56], sizes = [16, 8], strides = [1, 1]} : vector<16x64xf32> to vector<16x8xf32>
    %92 = arith.mulf %91, %12 : vector<16x8xf32>
    %93 = arith.addf %90, %92 : vector<16x8xf32>
    %94 = vector.extract_strided_slice %33 {offsets = [0, 32], sizes = [16, 8], strides = [1, 1]} : vector<16x64xf32> to vector<16x8xf32>
    %95 = arith.mulf %94, %13 : vector<16x8xf32>
    %96 = arith.addf %93, %95 : vector<16x8xf32>
    %97 = vector.extract_strided_slice %33 {offsets = [0, 40], sizes = [16, 8], strides = [1, 1]} : vector<16x64xf32> to vector<16x8xf32>
    %98 = arith.mulf %97, %14 : vector<16x8xf32>
    %99 = arith.addf %96, %98 : vector<16x8xf32>
    %100 = vector.extract_strided_slice %33 {offsets = [0, 48], sizes = [16, 8], strides = [1, 1]} : vector<16x64xf32> to vector<16x8xf32>
    %101 = arith.mulf %100, %15 : vector<16x8xf32>
    %102 = arith.addf %99, %101 : vector<16x8xf32>
    %103 = vector.extract_strided_slice %33 {offsets = [0, 56], sizes = [16, 8], strides = [1, 1]} : vector<16x64xf32> to vector<16x8xf32>
    %104 = arith.mulf %103, %16 : vector<16x8xf32>
    %105 = arith.addf %102, %104 : vector<16x8xf32>
    %106 = tpu.concatenate %69, %105 in 1 : vector<16x8xf32>, vector<16x8xf32> -> vector<16x16xf32>
    %c0_11 = arith.constant 0 : index
    %c0_12 = arith.constant 0 : index
    %107 = vector.load %arg3[%c0_11, %c0_12] : memref<16x16xf32, #tpu.memory_space<vmem>>, vector<16x16xf32>
    tpu.vector_store %arg3[%c0_11, %c0_12], %106 {strides = array<i32>} : memref<16x16xf32, #tpu.memory_space<vmem>>, vector<16x16xf32>,
    return
  }
}

</mosaic_0001>

<bundles_post_ra>
// kernel: tpu_custom_call.1
= control target key start
LH: loop header
LB: loop body
LE: loop exit
PB: predicated region body
PF: predicated region fallthrough
CT: control target
= control target key end

     0   :  { %vm20_vm0 = vcmask 64512   ;;  %s839_s0 = inlined_call_operand.vmem [shape: f32[16,8], index: 0, kind: input, shape index: {}]   ;;  %s840_s1 = inlined_call_operand.vmem [shape: f32[8,120], index: 1, kind: input, shape index: {}]   ;;  %s841_s2 = inlined_call_operand.vmem [shape: f32[16,64], index: 2, kind: input, shape index: {}]   ;;  %s842_s3 = inlined_call_operand.hbm [shape: f32[16,16], index: 3, kind: output, shape index: {}]  }
   0x1   :  { %v17_v0 = vld [vmem:[%s840_s1] sm:$0xff]  ;;  %v16_v2 = vld [vmem:[%s839_s0 + $0x8] sm:$0xff] }
   0x2   :  { %v15_v1 = vld [vmem:[%s839_s0] sm:$0xff]  ;;  %582 = vmatprep.subr.mxu0 %v17_v0 }
   0x3   :  { %584 = vmatprep.mubr.msk.f32.mxu0 %vm20_vm0, %v15_v1 }
   0x4   :  { %8 = vsyncpa [#allocation3], 0  ;;  %583 = vmatpush3.msra.mxu0 %v17_v0  ;;  %vm104_vm1 = vcmask 130048   ;;  %s655_s0 = smov 112   ;;  %s656_s1 = smov 80   ;;  %v716_v14 = vld [vmem:[%s841_s2] sm:$0xff] }
   0x5   :  { %585 = vmatmul.mubr.msk.f32.vlgmr.msra.gmra.mrb[0].mxu0 %vm20_vm0, %v16_v2  ;;  %s657_s18 = smov 48   ;;  %v730_v22 = vld [vmem:[%s841_s2 + $0x8] sm:$0xff]  ;;  %s658_s23 = smov 16  }
   0x6   :  { %v601_v23 = vpack.c.bf16 %v730_v22, %v716_v14  ;;  %s659_s2 = smov 104   ;;  %s660_s24 = smov 72  }
   0x7   :  { %s661_s25 = smov 96   ;;  %s662_s26 = smov 64  }
   0x8   :  { %602 = vmatprep.subr.bf16.mxu1 %v601_v23  ;;  %s663_s27 = smov 88   ;;  %s664_s28 = smov 56  }
   0x9   :  { %604 = vmatpush3.bf16.msra.mxu1 %v601_v23  ;;  %s665_s29 = smov 24   ;;  %s666_s30 = smov [#allocation2]  }
   0xa   :  { %s554_s4 = sshll.u32 %s666_s30, 4  ;;  %s555_s4 = int_to_ptr.vmem [resolvable:$true] %s554_s4 }
   0xb   :  { %s631_s5 = scalar_lea.vmem %s555_s4, 256  ;;  %p636_p1 = scmp.lt.s32.totalorder %s555_s4, %s555_s4 }
   0xc   :  { %p632_p0 = scmp.ne.s32.totalorder %s555_s4, %s631_s5  ;;  %p637_p2 = scmp.lt.s32.totalorder %s631_s5, %s631_s5 }
   0xe   :  { %p638_p3 = por %p637_p2, %p636_p1 }
  0x10   :  { %p639_p4 = pnand %p638_p3, %p632_p0 }
  0xd8   :  { %v700_v3 = vpop.f32.mrb[0].mxu0 }
  0xd9   :  { %v702_v4 = vpop.f32.mrb[1].mxu0  ;;  %v103_v7 = vmax.f32 %v700_v3, 0.0 }
  0xda   :  { %v102_v5 = vmax.f32 %v702_v4, 0.0 }
  0xdb   :  { %v108_v8 = vsel %vm104_vm1, %v103_v7, -inf }
  0xdc   :  { %v105_v6 = vsel %vm104_vm1, %v102_v5, -inf }
  0xdd   :  { %106 = vmax.xlane.f32.xlu0 %v105_v6 }
  0xe1   :  { %109 = vmax.xlane.f32.xlu0 %v108_v8 }
  0xf7   :  { %289 = vrot.lane.b32.xlu0 %v702_v4, %s655_s0 }
  0xfb   :  { %331 = vrot.lane.b32.xlu0 %v702_v4, %s656_s1 }
  0xff   :  { %373 = vrot.lane.b32.xlu0 %v702_v4, %s657_s18 }
 0x16a   :  { %v107_v9 = vpop.xlane.xlu0 %106 }
 0x16b   :  { %v111_v10 = vsub.f32 %v102_v5, %v107_v9 }
 0x16d   :  { %v113_v11 = vmul.f32 1.442695, %v111_v10 }
 0x16e   :  { %v110_v12 = vpop.xlane.xlu0 %109 }
 0x16f   :  { %623 = vpow2.f32 %v113_v11  ;;  %v112_v13 = vsub.f32 %v103_v7, %v110_v12 }
 0x171   :  { %v115_v15 = vmul.f32 1.442695, %v112_v13 }
 0x172   :  { %v718_v16 = vpop.permute.xlu0 %289 }
 0x173   :  { %625 = vpow2.f32 %v115_v15  ;;  %v295_v17 = vmul.f32 %v718_v16, %v716_v14 }
 0x175   :  { %299 = vrot.lane.b32.xlu0 %v295_v17, %s655_s0 }
 0x176   :  { %v741_v24 = vpop.permute.xlu0 %331 }
 0x179   :  { %v624_v18 = vpop.eup %623 }
 0x17a   :  { %v117_v19 = vsel %vm104_vm1, %v624_v18, 0.0  ;;  %v743_v25 = vpop.permute.xlu0 %373 }
 0x17b   :  { %118 = vadd.xlane.f32.xlu1 %v117_v19 }
 0x17d   :  { %v626_v20 = vpop.eup %625 }
 0x17e   :  { %v120_v21 = vsel %vm104_vm1, %v626_v20, 0.0 }
 0x17f   :  { %121 = vadd.xlane.f32.xlu1 %v120_v21 }
 0x190   :  { %291 = vrot.lane.b32.xlu1 %v700_v3, %s655_s0 }
 0x194   :  { %415 = vrot.lane.b32.xlu1 %v702_v4, %s658_s23 }
 0x198   :  { %417 = vrot.lane.b32.xlu1 %v700_v3, %s658_s23 }
 0x19c   :  { %333 = vrot.lane.b32.xlu1 %v700_v3, %s656_s1 }
 0x1a0   :  { %375 = vrot.lane.b32.xlu1 %v700_v3, %s657_s18 }
 0x1e7   :  { %v300_v26 = vpop.permute.xlu0 %299 }
 0x1e8   :  { %v746_v27 = vadd.f32 %v300_v26, %v702_v4 }
 0x208   :  { %v119_v28 = vpop.xlane.xlu1 %118 }
 0x209   :  { %627 = vrcp.f32 %v119_v28 }
 0x20c   :  { %v122_v29 = vpop.xlane.xlu1 %121 }
 0x20d   :  { %629 = vrcp.f32 %v122_v29 }
 0x210   :  { %v292_v30 = vpop.permute.xlu1 %291 }
 0x211   :  { %v296_v31 = vmul.f32 %v292_v30, %v730_v22 }
 0x213   :  { %v628_v32 = vpop.eup %627  ;;  %301 = vrot.lane.b32.xlu1 %v296_v31, %s655_s0 }
 0x214   :  { %v416_v33 = vpop.permute.xlu1 %415  ;;  %v124_v34 = vmul.f32 %v628_v32, %v624_v18 }
 0x215   :  { %v421_v35 = vmul.f32 %v416_v33, %v716_v14 }
 0x216   :  { %591 = vmatprep.mubr.msk.f32.mxu1 %vm104_vm1, %v124_v34  ;;  %598 = vmatprep.mubr.msk.f32.mxu0 %vm104_vm1, %v124_v34 }
 0x217   :  { %v630_v36 = vpop.eup %629  ;;  %425 = vrot.lane.b32.xlu0 %v421_v35, %s656_s1 }
 0x218   :  { %v418_v37 = vpop.permute.xlu1 %417  ;;  %v126_v38 = vmul.f32 %v630_v36, %v626_v20 }
 0x219   :  { %v422_v39 = vmul.f32 %v418_v37, %v730_v22 }
 0x21a   :  { %592 = vmatmul.mubr.msk.f32.vlgmr.msra.gmra.mrb[0].mxu1 %vm104_vm1, %v126_v38 }
 0x21b   :  { %427 = vrot.lane.b32.xlu1 %v422_v39, %s656_s1  ;;  %307 = vrot.lane.b32.xlu0 %v295_v17, %s659_s2 }
 0x21c   :  { %v334_v40 = vpop.permute.xlu1 %333 }
 0x21f   :  { %309 = vrot.lane.b32.xlu1 %v296_v31, %s659_s2  ;;  %433 = vrot.lane.b32.xlu0 %v421_v35, %s660_s24 }
 0x220   :  { %v376_v41 = vpop.permute.xlu1 %375 }
 0x223   :  { %435 = vrot.lane.b32.xlu1 %v422_v39, %s660_s24  ;;  %315 = vrot.lane.b32.xlu0 %v295_v17, %s661_s25 }
 0x227   :  { %317 = vrot.lane.b32.xlu1 %v296_v31, %s661_s25  ;;  %441 = vrot.lane.b32.xlu0 %v421_v35, %s662_s26 }
 0x22b   :  { %443 = vrot.lane.b32.xlu1 %v422_v39, %s662_s26  ;;  %323 = vrot.lane.b32.xlu0 %v295_v17, %s663_s27 }
 0x22f   :  { %325 = vrot.lane.b32.xlu1 %v296_v31, %s663_s27  ;;  %449 = vrot.lane.b32.xlu0 %v421_v35, %s664_s28 }
 0x233   :  { %451 = vrot.lane.b32.xlu1 %v422_v39, %s664_s28 }
 0x285   :  { %v302_v42 = vpop.permute.xlu1 %301 }
 0x286   :  { %v770_v43 = vadd.f32 %v700_v3, %v302_v42 }
 0x289   :  { %v426_v44 = vpop.permute.xlu0 %425 }
 0x28a   :  { %v773_v45 = vadd.f32 %v426_v44, %v702_v4 }
 0x28d   :  { %v428_v46 = vpop.permute.xlu1 %427  ;;  %v308_v2 = vpop.permute.xlu0 %307 }
 0x28e   :  { %v776_v47 = vadd.f32 %v700_v3, %v428_v46  ;;  %v313_v35 = vadd.f32 %v308_v2, %v746_v27 }
 0x291   :  { %v310_v1 = vpop.permute.xlu1 %309  ;;  %v434_v4 = vpop.permute.xlu0 %433 }
 0x292   :  { %v314_v33 = vadd.f32 %v310_v1, %v770_v43  ;;  %v439_v42 = vadd.f32 %v434_v4, %v773_v45 }
 0x295   :  { %v436_v3 = vpop.permute.xlu1 %435  ;;  %v316_v6 = vpop.permute.xlu0 %315 }
 0x296   :  { %v321_v37 = vadd.f32 %v316_v6, %v313_v35  ;;  %v440_v39 = vadd.f32 %v436_v3, %v776_v47 }
 0x299   :  { %v318_v5 = vpop.permute.xlu1 %317  ;;  %v442_v8 = vpop.permute.xlu0 %441 }
 0x29a   :  { %v322_v36 = vadd.f32 %v318_v5, %v314_v33 }
 0x29d   :  { %v444_v7 = vpop.permute.xlu1 %443  ;;  %v324_v10 = vpop.permute.xlu0 %323 }
 0x29e   :  { %v329_v44 = vadd.f32 %v324_v10, %v321_v37  ;;  %v448_v46 = vadd.f32 %v444_v7, %v440_v39 }
 0x2a1   :  { %v326_v9 = vpop.permute.xlu1 %325  ;;  %v450_v12 = vpop.permute.xlu0 %449 }
 0x2a5   :  { %v452_v11 = vpop.permute.xlu1 %451 }
 0x2ed   :  { %v593_v48 = vpop.f32.mrb[0].mxu1 }
 0x2ee   :  { %v338_v49 = vmul.f32 %v593_v48, %v334_v40  ;;  %v199_v50 = vpop.f32.mrb[1].mxu1  ;;  %v458_v53 = vmul.f32 %v593_v48, %v292_v30 }
 0x2ef   :  { %v605_v51 = vpack.c.bf16 %v593_v48, %v199_v50  ;;  %v337_v52 = vmul.f32 %v741_v24, %v199_v50  ;;  %v457_v54 = vmul.f32 %v718_v16, %v199_v50 }
 0x2f0   :  { %343 = vrot.lane.b32.xlu1 %v338_v49, %s655_s0 }
 0x2f1   :  { %606 = vmatprep.subr.bf16.mxu0 %v605_v51  ;;  %341 = vrot.lane.b32.xlu0 %v337_v52, %s655_s0 }
 0x2f2   :  { %608 = vmatpush3.bf16.msra.mxu0 %v605_v51 }
 0x2f4   :  { %463 = vrot.lane.b32.xlu1 %v458_v53, %s656_s1 }
 0x2f5   :  { %599 = vmatmul.mubr.msk.f32.vlgmr.msra.gmra.mrb[2].mxu0 %vm104_vm1, %v126_v38  ;;  %461 = vrot.lane.b32.xlu0 %v457_v54, %s656_s1 }
 0x2f8   :  { %351 = vrot.lane.b32.xlu1 %v338_v49, %s659_s2 }
 0x2f9   :  { %349 = vrot.lane.b32.xlu0 %v337_v52, %s659_s2 }
 0x2fc   :  { %471 = vrot.lane.b32.xlu1 %v458_v53, %s660_s24 }
 0x2fd   :  { %469 = vrot.lane.b32.xlu0 %v457_v54, %s660_s24 }
 0x300   :  { %359 = vrot.lane.b32.xlu1 %v338_v49, %s661_s25 }
 0x301   :  { %357 = vrot.lane.b32.xlu0 %v337_v52, %s661_s25 }
 0x304   :  { %479 = vrot.lane.b32.xlu1 %v458_v53, %s662_s26 }
 0x305   :  { %477 = vrot.lane.b32.xlu0 %v457_v54, %s662_s26 }
 0x308   :  { %367 = vrot.lane.b32.xlu1 %v338_v49, %s663_s27  ;;  %v447_v49 = vadd.f32 %v442_v8, %v439_v42 }
 0x309   :  { %365 = vrot.lane.b32.xlu0 %v337_v52, %s663_s27  ;;  %v456_v52 = vadd.f32 %v452_v11, %v448_v46 }
 0x30c   :  { %487 = vrot.lane.b32.xlu1 %v458_v53, %s664_s28 }
 0x30d   :  { %485 = vrot.lane.b32.xlu0 %v457_v54, %s664_s28  ;;  %v455_v54 = vadd.f32 %v450_v12, %v447_v49 }
 0x362   :  { %v344_v13 = vpop.permute.xlu1 %343 }
 0x366   :  { %v464_v15 = vpop.permute.xlu1 %463 }
 0x36a   :  { %v352_v17 = vpop.permute.xlu1 %351 }
 0x36e   :  { %v472_v19 = vpop.permute.xlu1 %471 }
 0x372   :  { %v360_v21 = vpop.permute.xlu1 %359 }
 0x376   :  { %v480_v23 = vpop.permute.xlu1 %479 }
 0x3c8   :  { %v600_v55 = vpop.f32.mrb[2].mxu0 }
 0x3c9   :  { %v284_v56 = vmul.f32 2.0, %v600_v55  ;;  %v274_v57 = vpop.f32.mrb[3].mxu0  ;;  %v468_v55 = vadd.f32 %v464_v15, %v456_v52 }
 0x3ca   :  { %v283_v58 = vmul.f32 2.0, %v274_v57 }
 0x3cb   :  { %v286_v59 = vsub.f32 %v284_v56, %v730_v22 }
 0x3cc   :  { %v285_v60 = vsub.f32 %v283_v58, %v716_v14  ;;  %v342_v14 = vpop.permute.xlu0 %341 }
 0x3cd   :  { %v380_v61 = vmul.f32 %v376_v41, %v286_v59  ;;  %v494_v63 = vmul.f32 %v334_v40, %v286_v59  ;;  %v330_v40 = vadd.f32 %v326_v9, %v322_v36  ;;  %v347_v50 = vadd.f32 %v342_v14, %v329_v44 }
 0x3ce   :  { %v379_v62 = vmul.f32 %v743_v25, %v285_v60  ;;  %v493_v0 = vmul.f32 %v741_v24, %v285_v60  ;;  %v368_v25 = vpop.permute.xlu1 %367  ;;  %v476_v59 = vadd.f32 %v472_v19, %v468_v55 }
 0x3cf   :  { %385 = vrot.lane.b32.xlu1 %v380_v61, %s655_s0  ;;  %v348_v48 = vadd.f32 %v344_v13, %v330_v40 }
 0x3d0   :  { %383 = vrot.lane.b32.xlu0 %v379_v62, %s655_s0  ;;  %v462_v16 = vpop.permute.xlu0 %461 }
 0x3d1   :  { %v356_v43 = vadd.f32 %v352_v17, %v348_v48  ;;  %v467_v57 = vadd.f32 %v462_v16, %v455_v54 }
 0x3d2   :  { %v488_v28 = vpop.permute.xlu1 %487 }
 0x3d3   :  { %499 = vrot.lane.b32.xlu1 %v494_v63, %s656_s1  ;;  %v364_v56 = vadd.f32 %v360_v21, %v356_v43 }
 0x3d4   :  { %497 = vrot.lane.b32.xlu0 %v493_v0, %s656_s1  ;;  %v350_v18 = vpop.permute.xlu0 %349 }
 0x3d5   :  { %v355_v27 = vadd.f32 %v350_v18, %v347_v50  ;;  %v372_v60 = vadd.f32 %v368_v25, %v364_v56 }
 0x3d7   :  { %393 = vrot.lane.b32.xlu1 %v380_v61, %s659_s2 }
 0x3d8   :  { %391 = vrot.lane.b32.xlu0 %v379_v62, %s659_s2  ;;  %v470_v20 = vpop.permute.xlu0 %469 }
 0x3d9   :  { %v475_v45 = vadd.f32 %v470_v20, %v467_v57 }
 0x3db   :  { %507 = vrot.lane.b32.xlu1 %v494_v63, %s660_s24 }
 0x3dc   :  { %505 = vrot.lane.b32.xlu0 %v493_v0, %s660_s24  ;;  %v358_v22 = vpop.permute.xlu0 %357 }
 0x3dd   :  { %v363_v58 = vadd.f32 %v358_v22, %v355_v27 }
 0x3df   :  { %401 = vrot.lane.b32.xlu1 %v380_v61, %s661_s25 }
 0x3e0   :  { %399 = vrot.lane.b32.xlu0 %v379_v62, %s661_s25  ;;  %v478_v24 = vpop.permute.xlu0 %477 }
 0x3e1   :  { %v483_v1 = vadd.f32 %v478_v24, %v475_v45 }
 0x3e3   :  { %515 = vrot.lane.b32.xlu1 %v494_v63, %s662_s26 }
 0x3e4   :  { %513 = vrot.lane.b32.xlu0 %v493_v0, %s662_s26  ;;  %v366_v26 = vpop.permute.xlu0 %365 }
 0x3e7   :  { %409 = vrot.lane.b32.xlu1 %v380_v61, %s663_s27 }
 0x3e8   :  { %407 = vrot.lane.b32.xlu0 %v379_v62, %s663_s27  ;;  %v486_v29 = vpop.permute.xlu0 %485  ;;  %v371_v62 = vadd.f32 %v366_v26, %v363_v58 }
 0x3e9   :  { %v491_v7 = vadd.f32 %v486_v29, %v483_v1 }
 0x3eb   :  { %523 = vrot.lane.b32.xlu1 %v494_v63, %s664_s28  ;;  %v484_v63 = vadd.f32 %v480_v23, %v476_v59 }
 0x3ec   :  { %521 = vrot.lane.b32.xlu0 %v493_v0, %s664_s28 }
 0x3ed   :  { %v492_v4 = vadd.f32 %v488_v28, %v484_v63 }
 0x441   :  { %v386_v30 = vpop.permute.xlu1 %385 }
 0x442   :  { %v384_v31 = vpop.permute.xlu0 %383  ;;  %v390_v0 = vadd.f32 %v386_v30, %v372_v60 }
 0x443   :  { %v389_v2 = vadd.f32 %v384_v31, %v371_v62 }
 0x445   :  { %v500_v32 = vpop.permute.xlu1 %499 }
 0x446   :  { %v498_v34 = vpop.permute.xlu0 %497  ;;  %v504_v9 = vadd.f32 %v500_v32, %v492_v4 }
 0x447   :  { %v503_v11 = vadd.f32 %v498_v34, %v491_v7 }
 0x449   :  { %v394_v38 = vpop.permute.xlu1 %393 }
 0x44a   :  { %v392_v41 = vpop.permute.xlu0 %391  ;;  %v398_v5 = vadd.f32 %v394_v38, %v390_v0 }
 0x44b   :  { %v397_v8 = vadd.f32 %v392_v41, %v389_v2 }
 0x44d   :  { %v508_v51 = vpop.permute.xlu1 %507 }
 0x44e   :  { %v506_v53 = vpop.permute.xlu0 %505  ;;  %v512_v14 = vadd.f32 %v508_v51, %v504_v9 }
 0x44f   :  { %v511_v17 = vadd.f32 %v506_v53, %v503_v11 }
 0x451   :  { %v402_v47 = vpop.permute.xlu1 %401 }
 0x452   :  { %v400_v61 = vpop.permute.xlu0 %399  ;;  %v406_v10 = vadd.f32 %v402_v47, %v398_v5 }
 0x453   :  { %v405_v12 = vadd.f32 %v400_v61, %v397_v8 }
 0x455   :  { %v516_v3 = vpop.permute.xlu1 %515 }
 0x456   :  { %v514_v6 = vpop.permute.xlu0 %513  ;;  %v520_v19 = vadd.f32 %v516_v3, %v512_v14 }
 0x457   :  { %v519_v20 = vadd.f32 %v514_v6, %v511_v17 }
 0x459   :  { %v410_v13 = vpop.permute.xlu1 %409 }
 0x45a   :  { %v414_v15 = vadd.f32 %v410_v13, %v406_v10  ;;  %v408_v16 = vpop.permute.xlu0 %407 }
 0x45b   :  { %v413_v18 = vadd.f32 %v408_v16, %v405_v12 }
 0x45c   :  { %533 = vrot.lane.b32.xlu1 %v414_v15, %s658_s23 }
 0x45d   :  { %v524_v21 = vpop.permute.xlu1 %523  ;;  %531 = vrot.lane.b32.xlu0 %v413_v18, %s658_s23 }
 0x45e   :  { %v528_v22 = vadd.f32 %v524_v21, %v520_v19  ;;  %v522_v23 = vpop.permute.xlu0 %521 }
 0x45f   :  { %v527_v24 = vadd.f32 %v522_v23, %v519_v20 }
 0x460   :  { %541 = vrot.lane.b32.xlu1 %v528_v22, %s665_s29 }
 0x461   :  { %539 = vrot.lane.b32.xlu0 %v527_v24, %s665_s29 }
 0x4ce   :  { %v534_v25 = vpop.permute.xlu1 %533 }
 0x4cf   :  { %v532_v26 = vpop.permute.xlu0 %531 }
 0x4d2   :  { %v542_v28 = vpop.permute.xlu1 %541 }
 0x4d3   :  { %v546_v29 = vsel %vm20_vm0, %v534_v25, %v542_v28  ;;  %v540_v30 = vpop.permute.xlu0 %539 }
 0x4d4   :  { %548 = vst.msk [vmem:[#allocation2 + $0x8] sm:$0xff] %vm104_vm1, %v546_v29  ;;  %v545_v31 = vsel %vm20_vm0, %v532_v26, %v540_v30 }
 0x4d5   :  { %547 = vst.msk [vmem:[#allocation2] sm:$0xff] %vm104_vm1, %v545_v31 }
 0x4d6   :  { %642 = shalt.err (!%p639_p4)
}
 0x4d7   :  { %s643_s8 = scalar_lea.hbm %s842_s3, 256 }
 0x4d8   :  { %p644_p5 = scmp.ne.s32.totalorder %s842_s3, %s643_s8  ;;  %p647_p6 = scmp.lt.u32.totalorder %s643_s8, %s842_s3 }
 0x4da   :  { %p649_p7 = pnand %p647_p6, %p644_p5 }
 0x4dc   :  { %652 = shalt.err (!%p649_p7)
}
 0x4dd   :  { %s667_s13 = smov 128   ;;  %s668_s14 = smov 8  }
 0x4de   :  { %560 = dma.vmem_to_hbm [thread:$0]  %s555_s4, 256, %s842_s3, [#allocation3], %s667_s13, %s667_s13, %s668_s14  }
 0x4df   :  { %653 = dma.done.wait [#allocation3], 256  }
 0x4e0   :  { %654 = vsyncadd [#allocation3], 4294967040 }
 0x4e1   :  { %564 = vsyncpa [#allocation3], 1 }

</bundles_post_ra>
